<compile_context>
chip_gen: v5e
topology: v5e:2x2
jax: 0.10.0
libtpu: 0.0.40
codegen_flags: <defaults>
</compile_context>

<pallas_src>
import jax
import jax.numpy as jnp
from jax.experimental import pallas as pl
from jax.experimental.pallas import tpu as pltpu

LANE = 128


def _round_up(n, m):
    return ((n + m - 1) // m) * m


def _cdiv(a, b):
    return (a + b - 1) // b


def _mlp_kernel(x_ref, w1_ref, b1_ref, w2_ref, b2_ref, o_ref):
    # First linear: bf16 operands, f32 MXU accumulation.
    h = jnp.dot(x_ref[...], w1_ref[...], preferred_element_type=jnp.float32)
    # Bias + ReLU in f32 on the VPU, then drop straight to bf16 so the
    # (TB, e_pad) intermediate is half-sized and feeds the second MXU pass.
    h = jnp.maximum(h + b1_ref[...], 0.0).astype(w2_ref.dtype)
    # Second linear, f32 accumulation; bias epilogue in f32.
    y = jnp.dot(h, w2_ref[...], preferred_element_type=jnp.float32)
    o_ref[...] = (y + b2_ref[...]).astype(o_ref.dtype)


class MLPPlainPallas:
    """ReLU(x @ w1 + b1) @ w2 + b2, fused in a single Pallas TPU kernel.

    w1: [h_size, embedding_size], b1: [embedding_size] or [1, embedding_size]
    w2: [embedding_size, y_size], b2: [y_size] or [1, y_size]
    """

    def __init__(self, w1, b1, w2, b2, *, block_batch=1024):
        self.h_size, self.e_size = w1.shape
        self.y_size = w2.shape[1]
        self.block_batch = int(block_batch)

        self.h_pad = _round_up(self.h_size, LANE)
        self.e_pad = _round_up(self.e_size, LANE)
        self.y_pad = _round_up(self.y_size, LANE)

        # One-time pad (zero lanes contribute exactly zero to the matmuls)
        # + bf16 cast of the matmul operands; biases stay f32 for the epilogue.
        self.w1_p = jnp.pad(w1.astype(jnp.bfloat16),
                            ((0, self.h_pad - self.h_size),
                             (0, self.e_pad - self.e_size)))
        self.w2_p = jnp.pad(w2.astype(jnp.bfloat16),
                            ((0, self.e_pad - self.e_size),
                             (0, self.y_pad - self.y_size)))
        self.b1_p = jnp.pad(b1.astype(jnp.float32).reshape(1, self.e_size),
                            ((0, 0), (0, self.e_pad - self.e_size)))
        self.b2_p = jnp.pad(b2.astype(jnp.float32).reshape(1, self.y_size),
                            ((0, 0), (0, self.y_pad - self.y_size)))

        self._fwd = jax.jit(self._forward)

    def _batch_tile(self, B):
        # Smallest tile preserving the step count of block_batch-sized tiles,
        # rounded to 16 rows (bf16 native (16,128) tile) -> minimal padding.
        n_steps = _cdiv(B, self.block_batch)
        tb = _round_up(_cdiv(B, n_steps), 16)
        if _cdiv(B, tb) < 2 and B > 16:
            # v7x megacore: keep >= 2 steps on the parallel batch axis.
            tb = _round_up(_cdiv(B, 2), 16)
        return tb, _cdiv(B, tb)

    def _forward(self, x, w1_p, b1_p, w2_p, b2_p):
        B = x.shape[0]
        out_dtype = x.dtype
        TB, n_steps = self._batch_tile(B)
        B_pad = TB * n_steps
        h_pad, e_pad, y_pad = self.h_pad, self.e_pad, self.y_pad

        # x pad + bf16 cast fuse into the surrounding jit (no extra HBM pass).
        x_p = jnp.pad(x.astype(jnp.bfloat16),
                      ((0, B_pad - B), (0, h_pad - self.h_size)))

        out_bytes = jnp.dtype(out_dtype).itemsize
        # Per-step VMEM working set: x/out double-buffered, weights single-
        # buffered, plus the f32 h intermediate.  2x headroom, clamped to
        # [32 MiB, 96 MiB] (safe on v7x for small problems, roomy on v5e/v6e).
        work_bytes = (2 * TB * h_pad * 2 + 2 * TB * y_pad * out_bytes
                      + (h_pad * e_pad + e_pad * y_pad) * 2
                      + (e_pad + y_pad) * 4
                      + TB * e_pad * 4)
        vmem_limit = int(min(max(2 * work_bytes, 32 * 1024 * 1024),
                             96 * 1024 * 1024))
        # NOTE: if bf16 w1+w2 ever exceed ~16 MiB, the next step is an e-axis
        # grid with a (TB, y_pad) f32 accumulator so w2 streams instead of
        # staying fully resident; unnecessary at these sizes.

        flops = 2 * B_pad * (h_pad * e_pad + e_pad * y_pad)
        bytes_accessed = (x_p.size * 2 + w1_p.size * 2 + w2_p.size * 2
                          + b1_p.size * 4 + b2_p.size * 4
                          + B_pad * y_pad * out_bytes)

        y_padded = pl.pallas_call(
            _mlp_kernel,
            out_shape=jax.ShapeDtypeStruct((B_pad, y_pad), out_dtype),
            grid=(n_steps,),
            in_specs=[
                # Activations tiled along the (parallel) batch grid axis.
                pl.BlockSpec((TB, h_pad), lambda i: (i, 0)),
                # Weights/biases: same block every step -> VMEM-resident and
                # single-buffered (no pointless double-buffer allocation).
                pl.BlockSpec((h_pad, e_pad), lambda i: (0, 0),
                             pipeline_mode=pl.Buffered(1)),
                pl.BlockSpec((1, e_pad), lambda i: (0, 0),
                             pipeline_mode=pl.Buffered(1)),
                pl.BlockSpec((e_pad, y_pad), lambda i: (0, 0),
                             pipeline_mode=pl.Buffered(1)),
                pl.BlockSpec((1, y_pad), lambda i: (0, 0),
                             pipeline_mode=pl.Buffered(1)),
            ],
            out_specs=pl.BlockSpec((TB, y_pad), lambda i: (i, 0)),
            compiler_params=pltpu.CompilerParams(
                dimension_semantics=("parallel",),
                vmem_limit_bytes=vmem_limit,
            ),
            cost_estimate=pl.CostEstimate(
                flops=flops, transcendentals=0, bytes_accessed=bytes_accessed),
        )(x_p, w1_p, b1_p, w2_p, b2_p)

        # Slice padded batch rows / output lanes back off (fuses into the jit).
        return y_padded[:B, :self.y_size]

    def __call__(self, x):
        return self._fwd(x, self.w1_p, self.b1_p, self.w2_p, self.b2_p)


def xavier_uniform_relu(key, fan_in, fan_out, dtype=jnp.float32):
    """Matches init.xavier_uniform(..., gain=calculate_gain('relu'))."""
    gain = jnp.sqrt(2.0)  # calculate_gain('relu')
    bound = gain * jnp.sqrt(6.0 / (fan_in + fan_out))
    # PyTorch weight is [out, in]; sample in that shape, transpose to [in, out].
    w_pt = jax.random.uniform(key, (fan_out, fan_in), dtype,
                              minval=-bound, maxval=bound)
    return w_pt.T


def linear_bias_init(key, fan_in, fan_out, dtype=jnp.float32):
    """Matches PyTorch nn.Linear default bias init: U(-1/sqrt(fan_in), +)."""
    bound = 1.0 / jnp.sqrt(fan_in)
    return jax.random.uniform(key, (1, fan_out), dtype,
                              minval=-bound, maxval=bound)


if __name__ == "__main__":
    # Small shapes consistent with MLP_plain(h_size, embedding_size, y_size).
    h_size = 32
    embedding_size = 64
    y_size = 16

    key = jax.random.PRNGKey(0)
    kx1, kx2, kw1, kb1, kw2, kb2 = jax.random.split(key, 6)

    w1 = xavier_uniform_relu(kw1, h_size, embedding_size)
    b1 = linear_bias_init(kb1, h_size, embedding_size)
    w2 = xavier_uniform_relu(kw2, embedding_size, y_size)
    b2 = linear_bias_init(kb2, embedding_size, y_size)

    mlp = MLPPlainPallas(w1, b1, w2, b2)

    def ref_fn(x):
        return jnp.maximum(x @ w1 + b1, 0.0) @ w2 + b2

    # batch=8: single grid step; batch=40: exercises the multi-step
    # (2-way parallel / megacore) path.
    for kk, batch in ((kx1, 8), (kx2, 40)):
        x = jax.random.normal(kk, (batch, h_size), jnp.float32)
        y = mlp(x)
        jax.block_until_ready(y)
        y_ref = ref_fn(x)
        assert y.shape == (batch, y_size)
        # Tolerance loosened for the bf16 matmul operands (f32 accumulation).
        assert jnp.allclose(y, y_ref, atol=1e-1, rtol=5e-2), (
            float(jnp.max(jnp.abs(y - y_ref))))

    print("KERNEL_OK")
</pallas_src>

<mosaic_0001>
module attributes {stable_mosaic.version = 11 : i64} {
  func.func @_mlp_kernel(%arg0: i32, %arg1: memref<16x128xbf16, #tpu.memory_space<vmem>>, %arg2: memref<128x128xbf16, #tpu.memory_space<vmem>>, %arg3: memref<1x128xf32, #tpu.memory_space<vmem>>, %arg4: memref<128x128xbf16, #tpu.memory_space<vmem>>, %arg5: memref<1x128xf32, #tpu.memory_space<vmem>>, %arg6: memref<16x128xf32, #tpu.memory_space<vmem>>) attributes {dimension_semantics = [#tpu.dimension_semantics<parallel>], iteration_bounds = array<i64: 1>, scalar_prefetch = 0 : i64, scratch_operands = 0 : i64, tpu.core_type = #tpu.core_type<tc>, window_params = [{transform_indices = @transform_0, window_bounds = array<i64: 16, 128>}, {pipeline_mode = #tpu.pipeline_mode<synchronous>, transform_indices = @transform_1, window_bounds = array<i64: 128, 128>}, {pipeline_mode = #tpu.pipeline_mode<synchronous>, transform_indices = @transform_2, window_bounds = array<i64: 1, 128>}, {pipeline_mode = #tpu.pipeline_mode<synchronous>, transform_indices = @transform_3, window_bounds = array<i64: 128, 128>}, {pipeline_mode = #tpu.pipeline_mode<synchronous>, transform_indices = @transform_4, window_bounds = array<i64: 1, 128>}, {transform_indices = @transform_5, window_bounds = array<i64: 16, 128>}]} {
    %c0 = arith.constant 0 : index
    %c0_0 = arith.constant 0 : index
    %0 = vector.load %arg1[%c0, %c0_0] : memref<16x128xbf16, #tpu.memory_space<vmem>>, vector<16x128xbf16>
    %c0_1 = arith.constant 0 : index
    %c0_2 = arith.constant 0 : index
    %1 = vector.load %arg2[%c0_1, %c0_2] : memref<128x128xbf16, #tpu.memory_space<vmem>>, vector<128x128xbf16>
    %cst = arith.constant dense<0.000000e+00> : vector<16x128xf32>
    %2 = tpu.matmul %0, %1, %cst {dimension_numbers = #tpu.dot_dimension_numbers<[1], [0], [0], [1], [0, 0, 1, 1], [], []>} : vector<16x128xbf16>, vector<128x128xbf16>, vector<16x128xf32> -> vector<16x128xf32>
    %c0_3 = arith.constant 0 : index
    %c0_4 = arith.constant 0 : index
    %3 = vector.load %arg3[%c0_3, %c0_4] : memref<1x128xf32, #tpu.memory_space<vmem>>, vector<1x128xf32>
    %4 = vector.broadcast %3 : vector<1x128xf32> to vector<16x128xf32>
    %5 = arith.addf %2, %4 : vector<16x128xf32>
    %cst_5 = arith.constant 0.000000e+00 : f32
    %6 = vector.broadcast %cst_5 : f32 to vector<16x128xf32>
    %7 = arith.maximumf %5, %6 : vector<16x128xf32>
    %8 = arith.truncf %7 : vector<16x128xf32> to vector<16x128xbf16>
    %c0_6 = arith.constant 0 : index
    %c0_7 = arith.constant 0 : index
    %9 = vector.load %arg4[%c0_6, %c0_7] : memref<128x128xbf16, #tpu.memory_space<vmem>>, vector<128x128xbf16>
    %cst_8 = arith.constant dense<0.000000e+00> : vector<16x128xf32>
    %10 = tpu.matmul %8, %9, %cst_8 {dimension_numbers = #tpu.dot_dimension_numbers<[1], [0], [0], [1], [0, 0, 1, 1], [], []>} : vector<16x128xbf16>, vector<128x128xbf16>, vector<16x128xf32> -> vector<16x128xf32>
    %c0_9 = arith.constant 0 : index
    %c0_10 = arith.constant 0 : index
    %11 = vector.load %arg5[%c0_9, %c0_10] : memref<1x128xf32, #tpu.memory_space<vmem>>, vector<1x128xf32>
    %12 = vector.broadcast %11 : vector<1x128xf32> to vector<16x128xf32>
    %13 = arith.addf %10, %12 : vector<16x128xf32>
    %c0_11 = arith.constant 0 : index
    %c0_12 = arith.constant 0 : index
    %14 = vector.load %arg6[%c0_11, %c0_12] : memref<16x128xf32, #tpu.memory_space<vmem>>, vector<16x128xf32>
    tpu.vector_store %arg6[%c0_11, %c0_12], %13 {strides = array<i32>} : memref<16x128xf32, #tpu.memory_space<vmem>>, vector<16x128xf32>,
    return
  }
  func.func @transform_0(%arg0: i32) -> (i32, i32) {
    %c0_i32 = arith.constant 0 : i32
    %c0_i32_0 = arith.constant 0 : i32
    return %arg0, %c0_i32 : i32, i32
  }
  func.func @transform_1(%arg0: i32) -> (i32, i32) {
    %c0_i32 = arith.constant 0 : i32
    %c0_i32_0 = arith.constant 0 : i32
    %c0_i32_1 = arith.constant 0 : i32
    return %c0_i32, %c0_i32_0 : i32, i32
  }
  func.func @transform_2(%arg0: i32) -> (i32, i32) {
    %c0_i32 = arith.constant 0 : i32
    %c0_i32_0 = arith.constant 0 : i32
    %c0_i32_1 = arith.constant 0 : i32
    return %c0_i32, %c0_i32_0 : i32, i32
  }
  func.func @transform_3(%arg0: i32) -> (i32, i32) {
    %c0_i32 = arith.constant 0 : i32
    %c0_i32_0 = arith.constant 0 : i32
    %c0_i32_1 = arith.constant 0 : i32
    return %c0_i32, %c0_i32_0 : i32, i32
  }
  func.func @transform_4(%arg0: i32) -> (i32, i32) {
    %c0_i32 = arith.constant 0 : i32
    %c0_i32_0 = arith.constant 0 : i32
    %c0_i32_1 = arith.constant 0 : i32
    return %c0_i32, %c0_i32_0 : i32, i32
  }
  func.func @transform_5(%arg0: i32) -> (i32, i32) {
    %c0_i32 = arith.constant 0 : i32
    %c0_i32_0 = arith.constant 0 : i32
    return %arg0, %c0_i32 : i32, i32
  }
}

</mosaic_0001>

<bundles_post_ra>
// kernel: _forward.1
= control target key start
LH: loop header
LB: loop body
LE: loop exit
PB: predicated region body
PF: predicated region fallthrough
CT: control target
= control target key end

     0   :  { %10 = vsyncpa [#allocation3], 0  ;;  %s433_s0 = inlined_call_operand.vmem [shape: bf16[16,128], index: 0, kind: input, shape index: {}]   ;;  %s434_s1 = inlined_call_operand.hbm [shape: bf16[128,128], index: 1, kind: input, shape index: {}]   ;;  %s435_s2 = inlined_call_operand.vmem [shape: f32[1,128], index: 2, kind: input, shape index: {}]   ;;  %s436_s3 = inlined_call_operand.hbm [shape: bf16[128,128], index: 3, kind: input, shape index: {}]   ;;  %s437_s4 = inlined_call_operand.vmem [shape: f32[1,128], index: 4, kind: input, shape index: {}]   ;;  %s438_s5 = inlined_call_operand.vmem [shape: f32[16,128], index: 5, kind: output, shape index: {}]  }
   0x1   :  { %s18_s20 = sshll.u32 %s434_s1, 4  ;;  %s19_s20 = int_to_ptr.hbm [resolvable:$true] %s18_s20 }
   0x2   :  { %11 = vsyncpa [#allocation5], 0  ;;  %s378_s21 = smov [#allocation2]   ;;  %s33_s25 = sshll.u32 %s436_s3, 4  ;;  %s34_s25 = int_to_ptr.hbm [resolvable:$true] %s33_s25 }
   0x3   :  { %s20_s22 = sshll.u32 %s378_s21, 4  ;;  %s379_s26 = smov 64   ;;  %s21_s22 = int_to_ptr.vmem [resolvable:$true] %s20_s22 }
   0x4   :  { %s380_s27 = smov 4   ;;  %s381_s28 = smov [#allocation4]  }
   0x5   :  { %26 = dma.hbm_to_vmem [thread:$0]  %s19_s20, 1024, %s21_s22, [#allocation3], %s379_s26, %s379_s26, %s380_s27  }
   0x6   :  { %s35_s29 = sshll.u32 %s381_s28, 4  ;;  %s36_s29 = int_to_ptr.vmem [resolvable:$true] %s35_s29 }
   0x7   :  { %41 = dma.hbm_to_vmem [thread:$0]  %s34_s25, 1024, %s36_s29, [#allocation5], %s379_s26, %s379_s26, %s380_s27  }
   0x8   :  { %374 = dma.done.wait [#allocation3], 1024  }
   0x9   :  { %375 = vsyncadd [#allocation3], 4294966272 }
   0xa   :  { %376 = dma.done.wait [#allocation5], 1024  }
   0xb   :  { %377 = vsyncadd [#allocation5], 4294966272  ;;  %v311_v0 = vld [vmem:[#allocation2 + $0x38] sm:$0xff]  ;;  %v310_v1 = vld [vmem:[#allocation2 + $0x30] sm:$0xff] }
   0xc   :  { %128 = vmatpush.bf16.msra.mxu0 %v311_v0  ;;  %v319_v2 = vld [vmem:[#allocation4 + $0x38] sm:$0xff]  ;;  %v318_v3 = vld [vmem:[#allocation4 + $0x30] sm:$0xff]  ;;  %v309_v4 = vld [vmem:[#allocation2 + $0x28] sm:$0xff] }
   0xd   :  { %213 = vmatpush.bf16.msra.mxu1 %v319_v2  ;;  %v317_v5 = vld [vmem:[#allocation4 + $0x28] sm:$0xff]  ;;  %v308_v6 = vld [vmem:[#allocation2 + $0x20] sm:$0xff]  ;;  %v307_v8 = vld [vmem:[#allocation2 + $0x18] sm:$0xff] }
   0xe   :  { %v316_v7 = vld [vmem:[#allocation4 + $0x20] sm:$0xff]  ;;  %v306_v9 = vld [vmem:[#allocation2 + $0x10] sm:$0xff]  ;;  %v305_v10 = vld [vmem:[#allocation2 + $0x8] sm:$0xff] }
   0xf   :  { %v304_v11 = vld [vmem:[#allocation2] sm:$0xff]  ;;  %v315_v13 = vld [vmem:[#allocation4 + $0x18] sm:$0xff]  ;;  %v314_v14 = vld [vmem:[#allocation4 + $0x10] sm:$0xff] }
  0x10   :  { %129 = vmatpush.bf16.msra.mxu0 %v310_v1  ;;  %v303_v12 = vld [vmem:[%s433_s0] sm:$0xff]  ;;  %v313_v15 = vld [vmem:[#allocation4 + $0x8] sm:$0xff] }
  0x11   :  { %214 = vmatpush.bf16.msra.mxu1 %v318_v3  ;;  %v312_v16 = vld [vmem:[#allocation4] sm:$0xff] }
  0x12   :  { %v324_v18 = vld [vmem:[%s435_s2] ss:$0 sm:$0xff] }
  0x13   :  { %v325_v25 = vld [vmem:[%s437_s4] ss:$0 sm:$0xff] }
  0x14   :  { %130 = vmatpush.bf16.msra.mxu0 %v309_v4 }
  0x15   :  { %215 = vmatpush.bf16.msra.mxu1 %v317_v5 }
  0x18   :  { %131 = vmatpush.bf16.msra.mxu0 %v308_v6 }
  0x19   :  { %216 = vmatpush.bf16.msra.mxu1 %v316_v7 }
  0x1c   :  { %132 = vmatpush.bf16.msra.mxu0 %v307_v8 }
  0x1d   :  { %217 = vmatpush.bf16.msra.mxu1 %v315_v13 }
  0x20   :  { %133 = vmatpush.bf16.msra.mxu0 %v306_v9 }
  0x21   :  { %218 = vmatpush.bf16.msra.mxu1 %v314_v14 }
  0x24   :  { %134 = vmatpush.bf16.msra.mxu0 %v305_v10 }
  0x25   :  { %219 = vmatpush.bf16.msra.mxu1 %v313_v15 }
  0x28   :  { %135 = vmatpush.bf16.msra.mxu0 %v304_v11 }
  0x29   :  { %220 = vmatpush.bf16.msra.mxu1 %v312_v16 }
  0x2b   :  { %136 = vmatmul.bf16.vlgmr.msra.gmra.mxu0 %v303_v12 }
  0xa8   :  { %v137_v17 = vpop.f32.mrf.mxu0 }
  0xa9   :  { %v138_v19 = vadd.f32 %v324_v18, %v137_v17 }
  0xab   :  { %v142_v22 = vmax.f32 %v138_v19, 0.0 }
  0xb0   :  { %v139_v20 = vpop.f32.mrf.mxu0 }
  0xb1   :  { %v140_v21 = vadd.f32 %v324_v18, %v139_v20 }
  0xb3   :  { %v143_v23 = vmax.f32 %v140_v21, 0.0 }
  0xb5   :  { %v144_v24 = vpack.c.bf16 %v143_v23, %v142_v22 }
  0xb7   :  { %221 = vmatmul.bf16.vlgmr.msra.gmra.mxu1 %v144_v24 }
 0x134   :  { %v222_v26 = vpop.f32.mrf.mxu1 }
 0x135   :  { %v223_v27 = vadd.f32 %v325_v25, %v222_v26 }
 0x137   :  { %227 = vst [vmem:[%s438_s5] sm:$0xff] %v223_v27 }
 0x13c   :  { %v224_v28 = vpop.f32.mrf.mxu1 }
 0x13d   :  { %v225_v29 = vadd.f32 %v325_v25, %v224_v28 }
 0x13f   :  { %228 = vst [vmem:[%s438_s5 + $0x8] sm:$0xff] %v225_v29 }
 0x140   :  { %233 = vsyncpa [#allocation3], 1 }
 0x141   :  { %234 = vsyncpa [#allocation5], 1 }

</bundles_post_ra>
